<compile_context>
chip_gen: v5e
topology: v5e:2x2
jax: 0.10.0
libtpu: 0.0.40
codegen_flags: <defaults>
</compile_context>

<pallas_src>
import functools

import jax
import jax.numpy as jnp
from jax.experimental import pallas as pl
from jax.experimental.pallas import tpu as pltpu


def _cdiv(a, b):
    return -(-a // b)


def _round_up(x, m):
    return ((x + m - 1) // m) * m


def _readout_kernel(v0_ref, v1_ref, w_ref, b_ref, out_ref, acc_ref, *,
                    n_rows, node_dim, tile_rows, tiles_per_split):
    c = pl.program_id(0)          # "parallel" split (megacore on v7x)
    i = pl.program_id(1)          # "arbitrary" reduction over row tiles

    @pl.when(i == 0)
    def _init():
        acc_ref[...] = jnp.zeros_like(acc_ref)

    w = w_ref[...]                # [2D, 2D], PyTorch (out, in) layout

    # concat([v0, v1], 1) @ W.T  ==  v0 @ W[:, :D].T + v1 @ W[:, D:].T
    dn = (((1,), (1,)), ((), ()))           # contract feature axis with W's "in" axis
    y = jax.lax.dot_general(v0_ref[...], w[:, :node_dim], dn,
                            preferred_element_type=jnp.float32)
    y = y + jax.lax.dot_general(v1_ref[...], w[:, node_dim:], dn,
                                preferred_element_type=jnp.float32)
    y = y + b_ref[...].astype(jnp.float32)  # bias broadcast over rows
    y = jnp.maximum(y, 0.0)                 # ReLU

    # Mask rows beyond the true N (ragged last tile / clamped duplicate tiles).
    start = (c * tiles_per_split + i) * tile_rows
    row_ids = start + jax.lax.broadcasted_iota(jnp.int32, (tile_rows, 1), 0)
    y = jnp.where(row_ids < n_rows, y, 0.0)

    acc_ref[...] += jnp.sum(y, axis=0, keepdims=True)

    @pl.when(i == tiles_per_split - 1)
    def _finalize():
        out_ref[0] = acc_ref[...].astype(out_ref.dtype)


def _choose_tile_rows(n_rows, node_dim, itemsize, num_splits, max_tile_rows,
                      vmem_budget_bytes=8 * 1024 * 1024):
    # 2 row-tiled inputs x 2 pipeline buffers each must stay under budget.
    per_row_bytes = 4 * node_dim * itemsize
    cap = max(8, (vmem_budget_bytes // per_row_bytes) // 8 * 8)
    rows_per_split = _round_up(max(1, _cdiv(n_rows, num_splits)), 8)
    return int(max(8, min(max_tile_rows, cap, rows_per_split)))


def readout_layer(var_v0, var_v1, weight, bias, *, num_splits=2,
                  max_tile_rows=512):
    """Pallas implementation of ReadoutLayer.forward.

    var_v0/var_v1 : [N, node_dim] (f32 or bf16)
    weight        : [2*node_dim, 2*node_dim]  PyTorch Linear weight (out, in)
    bias          : [2*node_dim]
    returns       : [1, 2*node_dim] float32
    """
    n, d = var_v0.shape
    d2 = 2 * d
    assert var_v1.shape == (n, d)
    assert weight.shape == (d2, d2) and bias.shape == (d2,)

    itemsize = jnp.dtype(var_v0.dtype).itemsize
    tile_rows = _choose_tile_rows(n, d, itemsize, num_splits, max_tile_rows)
    n_tiles = _cdiv(n, tile_rows)
    num_splits = max(1, min(num_splits, n_tiles))
    tiles_per_split = _cdiv(n_tiles, num_splits)
    last_block = n_tiles - 1
    needs_clamp = num_splits * tiles_per_split > n_tiles

    def row_map(c, i):
        idx = c * tiles_per_split + i
        if needs_clamp:                 # static Python bool at trace time
            idx = jnp.minimum(idx, last_block)
        return (idx, 0)

    kernel = functools.partial(
        _readout_kernel, n_rows=n, node_dim=d, tile_rows=tile_rows,
        tiles_per_split=tiles_per_split)

    partials = pl.pallas_call(
        kernel,
        out_shape=jax.ShapeDtypeStruct((num_splits, 1, d2), jnp.float32),
        grid=(num_splits, tiles_per_split),
        in_specs=[
            pl.BlockSpec((tile_rows, d), row_map),            # v0 row tile
            pl.BlockSpec((tile_rows, d), row_map),            # v1 row tile
            pl.BlockSpec((d2, d2), lambda c, i: (0, 0)),      # weight (resident)
            pl.BlockSpec((1, d2), lambda c, i: (0, 0)),       # bias   (resident)
        ],
        out_specs=pl.BlockSpec((1, 1, d2), lambda c, i: (c, 0, 0)),
        scratch_shapes=[pltpu.VMEM((1, d2), jnp.float32)],
        compiler_params=pltpu.CompilerParams(
            dimension_semantics=("parallel", "arbitrary")),
    )(var_v0, var_v1, weight, bias.reshape(1, d2))

    # Combine the (<=2) per-core partial sums into the [1, 2D] readout.
    return jnp.sum(partials[:, 0, :], axis=0, keepdims=True)


def readout_reference(var_v0, var_v1, weight, bias):
    """Plain-JAX reference mirroring the PyTorch module."""
    catted = jnp.concatenate([var_v0, var_v1], axis=1)
    act = jax.nn.relu(catted @ weight.T + bias)
    return jnp.sum(act, axis=0, keepdims=True)


if __name__ == "__main__":
    key = jax.random.PRNGKey(0)

    def make_case(case_key, n_nodes, node_dim):
        k0, k1, kw, kb = jax.random.split(case_key, 4)
        d2 = 2 * node_dim
        bound = 1.0 / (d2 ** 0.5)
        v0 = jax.random.normal(k0, (n_nodes, node_dim), dtype=jnp.float32)
        v1 = jax.random.normal(k1, (n_nodes, node_dim), dtype=jnp.float32)
        w = jax.random.uniform(kw, (d2, d2), minval=-bound, maxval=bound,
                               dtype=jnp.float32)
        b = jax.random.uniform(kb, (d2,), minval=-bound, maxval=bound,
                               dtype=jnp.float32)
        return v0, v1, w, b

    # (N, node_dim): toy size, ragged-tile size, multi-tile-per-split size.
    cases = [(8, 16), (1000, 16), (2000, 8)]
    case_keys = jax.random.split(key, len(cases))
    for ck, (n_nodes, node_dim) in zip(case_keys, cases):
        v0, v1, w, b = make_case(ck, n_nodes, node_dim)
        out = jax.block_until_ready(readout_layer(v0, v1, w, b))
        ref = readout_reference(v0, v1, w, b)
        assert out.shape == (1, 2 * node_dim)
        assert jnp.allclose(out, ref, rtol=1e-4, atol=1e-3), (n_nodes, node_dim)

    print("KERNEL_OK")
</pallas_src>

<mosaic_0001>
module attributes {stable_mosaic.version = 11 : i64} {
  func.func @_readout_kernel(%arg0: i32, %arg1: i32, %arg2: memref<8x16xf32, #tpu.memory_space<vmem>>, %arg3: memref<8x16xf32, #tpu.memory_space<vmem>>, %arg4: memref<32x32xf32, #tpu.memory_space<vmem>>, %arg5: memref<1x32xf32, #tpu.memory_space<vmem>>, %arg6: memref<1x1x32xf32, #tpu.memory_space<vmem>>, %arg7: memref<1x32xf32, #tpu.memory_space<vmem>>) attributes {dimension_semantics = [#tpu.dimension_semantics<parallel>, #tpu.dimension_semantics<arbitrary>], iteration_bounds = array<i64: 1, 1>, scalar_prefetch = 0 : i64, scratch_operands = 1 : i64, tpu.core_type = #tpu.core_type<tc>, window_params = [{transform_indices = @transform_0, window_bounds = array<i64: 8, 16>}, {transform_indices = @transform_1, window_bounds = array<i64: 8, 16>}, {pipeline_mode = #tpu.pipeline_mode<synchronous>, transform_indices = @transform_2, window_bounds = array<i64: 32, 32>}, {pipeline_mode = #tpu.pipeline_mode<synchronous>, transform_indices = @transform_3, window_bounds = array<i64: 1, 32>}, {transform_indices = @transform_4, window_bounds = array<i64: 1, 1, 32>}]} {
    %c0_i32 = arith.constant 0 : i32
    %0 = arith.cmpi eq, %arg1, %c0_i32 : i32
    %1 = arith.extui %0 : i1 to i32
    %c0_i32_0 = arith.constant 0 : i32
    %2 = arith.cmpi ne, %1, %c0_i32_0 : i32
    scf.if %2 {
      %cst_19 = arith.constant 0.000000e+00 : f32
      %36 = vector.broadcast %cst_19 : f32 to vector<1x32xf32>
      %c0_20 = arith.constant 0 : index
      %c0_21 = arith.constant 0 : index
      %37 = vector.load %arg7[%c0_20, %c0_21] : memref<1x32xf32, #tpu.memory_space<vmem>>, vector<1x32xf32>
      tpu.vector_store %arg7[%c0_20, %c0_21], %36 {strides = array<i32>} : memref<1x32xf32, #tpu.memory_space<vmem>>, vector<1x32xf32>,
    } else {
    }
    %c0 = arith.constant 0 : index
    %c0_1 = arith.constant 0 : index
    %3 = vector.load %arg4[%c0, %c0_1] : memref<32x32xf32, #tpu.memory_space<vmem>>, vector<32x32xf32>
    %c0_2 = arith.constant 0 : index
    %c0_3 = arith.constant 0 : index
    %4 = vector.load %arg2[%c0_2, %c0_3] : memref<8x16xf32, #tpu.memory_space<vmem>>, vector<8x16xf32>
    %5 = vector.extract_strided_slice %3 {offsets = [0, 0], sizes = [32, 16], strides = [1, 1]} : vector<32x32xf32> to vector<32x16xf32>
    %cst = arith.constant dense<0.000000e+00> : vector<8x32xf32>
    %6 = tpu.matmul %4, %5, %cst {dimension_numbers = #tpu.dot_dimension_numbers<[1], [1], [0], [0], [0, 0, 1, 0], [], []>} : vector<8x16xf32>, vector<32x16xf32>, vector<8x32xf32> -> vector<8x32xf32>
    %c0_4 = arith.constant 0 : index
    %c0_5 = arith.constant 0 : index
    %7 = vector.load %arg3[%c0_4, %c0_5] : memref<8x16xf32, #tpu.memory_space<vmem>>, vector<8x16xf32>
    %8 = vector.extract_strided_slice %3 {offsets = [0, 16], sizes = [32, 16], strides = [1, 1]} : vector<32x32xf32> to vector<32x16xf32>
    %cst_6 = arith.constant dense<0.000000e+00> : vector<8x32xf32>
    %9 = tpu.matmul %7, %8, %cst_6 {dimension_numbers = #tpu.dot_dimension_numbers<[1], [1], [0], [0], [0, 0, 1, 0], [], []>} : vector<8x16xf32>, vector<32x16xf32>, vector<8x32xf32> -> vector<8x32xf32>
    %10 = arith.addf %6, %9 : vector<8x32xf32>
    %c0_7 = arith.constant 0 : index
    %c0_8 = arith.constant 0 : index
    %11 = vector.load %arg5[%c0_7, %c0_8] : memref<1x32xf32, #tpu.memory_space<vmem>>, vector<1x32xf32>
    %12 = vector.broadcast %11 : vector<1x32xf32> to vector<8x32xf32>
    %13 = arith.addf %10, %12 : vector<8x32xf32>
    %cst_9 = arith.constant 0.000000e+00 : f32
    %14 = vector.broadcast %cst_9 : f32 to vector<8x32xf32>
    %15 = arith.maximumf %13, %14 : vector<8x32xf32>
    %c1_i32 = arith.constant 1 : i32
    %16 = arith.muli %arg0, %c1_i32 : i32
    %17 = arith.addi %16, %arg1 : i32
    %c8_i32 = arith.constant 8 : i32
    %18 = arith.muli %17, %c8_i32 : i32
    %19 = tpu.iota {dimensions = array<i32: 0>} : vector<8x1xi32>
    %20 = vector.broadcast %18 : i32 to vector<8x1xi32>
    %21 = arith.addi %20, %19 : vector<8x1xi32>
    %c8_i32_10 = arith.constant 8 : i32
    %22 = vector.broadcast %c8_i32_10 : i32 to vector<8x1xi32>
    %23 = arith.cmpi slt, %21, %22 : vector<8x1xi32>
    %cst_11 = arith.constant 0.000000e+00 : f32
    %24 = vector.shape_cast %23 : vector<8x1xi1> to vector<8x1xi1>
    %25 = vector.broadcast %24 : vector<8x1xi1> to vector<8x32xi1>
    %26 = vector.broadcast %cst_11 : f32 to vector<8x32xf32>
    %27 = arith.select %25, %15, %26 : vector<8x32xi1>, vector<8x32xf32>
    %c0_12 = arith.constant 0 : index
    %c0_13 = arith.constant 0 : index
    %28 = vector.load %arg7[%c0_12, %c0_13] : memref<1x32xf32, #tpu.memory_space<vmem>>, vector<1x32xf32>
    %cst_14 = arith.constant dense<0.000000e+00> : vector<32xf32>
    %29 = vector.multi_reduction <add>, %27, %cst_14 [0] : vector<8x32xf32> to vector<32xf32>
    %30 = vector.shape_cast %29 : vector<32xf32> to vector<1x32xf32>
    %31 = arith.addf %28, %30 : vector<1x32xf32>
    %c0_15 = arith.constant 0 : index
    %c0_16 = arith.constant 0 : index
    %32 = vector.load %arg7[%c0_15, %c0_16] : memref<1x32xf32, #tpu.memory_space<vmem>>, vector<1x32xf32>
    tpu.vector_store %arg7[%c0_15, %c0_16], %31 {strides = array<i32>} : memref<1x32xf32, #tpu.memory_space<vmem>>, vector<1x32xf32>,
    %c0_i32_17 = arith.constant 0 : i32
    %33 = arith.cmpi eq, %arg1, %c0_i32_17 : i32
    %34 = arith.extui %33 : i1 to i32
    %c0_i32_18 = arith.constant 0 : i32
    %35 = arith.cmpi ne, %34, %c0_i32_18 : i32
    scf.if %35 {
      %c0_19 = arith.constant 0 : index
      %c0_20 = arith.constant 0 : index
      %36 = vector.load %arg7[%c0_19, %c0_20] : memref<1x32xf32, #tpu.memory_space<vmem>>, vector<1x32xf32>
      %c0_21 = arith.constant 0 : index
      %c0_22 = arith.constant 0 : index
      %c0_23 = arith.constant 0 : index
      %37 = vector.load %arg6[%c0_21, %c0_22, %c0_23] : memref<1x1x32xf32, #tpu.memory_space<vmem>>, vector<1x1x32xf32>
      %38 = vector.shape_cast %37 : vector<1x1x32xf32> to vector<1x32xf32>
      %39 = vector.shape_cast %36 : vector<1x32xf32> to vector<1x1x32xf32>
      tpu.vector_store %arg6[%c0_21, %c0_22, %c0_23], %39 {strides = array<i32>} : memref<1x1x32xf32, #tpu.memory_space<vmem>>, vector<1x1x32xf32>,
    } else {
    }
    return
  }
  func.func @transform_0(%arg0: i32, %arg1: i32) -> (i32, i32) {
    %c1_i32 = arith.constant 1 : i32
    %0 = arith.muli %arg0, %c1_i32 : i32
    %1 = arith.addi %0, %arg1 : i32
    %c0_i32 = arith.constant 0 : i32
    %c0_i32_0 = arith.constant 0 : i32
    return %1, %c0_i32 : i32, i32
  }
  func.func @transform_1(%arg0: i32, %arg1: i32) -> (i32, i32) {
    %c1_i32 = arith.constant 1 : i32
    %0 = arith.muli %arg0, %c1_i32 : i32
    %1 = arith.addi %0, %arg1 : i32
    %c0_i32 = arith.constant 0 : i32
    %c0_i32_0 = arith.constant 0 : i32
    return %1, %c0_i32 : i32, i32
  }
  func.func @transform_2(%arg0: i32, %arg1: i32) -> (i32, i32) {
    %c0_i32 = arith.constant 0 : i32
    %c0_i32_0 = arith.constant 0 : i32
    %c0_i32_1 = arith.constant 0 : i32
    return %c0_i32, %c0_i32_0 : i32, i32
  }
  func.func @transform_3(%arg0: i32, %arg1: i32) -> (i32, i32) {
    %c0_i32 = arith.constant 0 : i32
    %c0_i32_0 = arith.constant 0 : i32
    %c0_i32_1 = arith.constant 0 : i32
    return %c0_i32, %c0_i32_0 : i32, i32
  }
  func.func @transform_4(%arg0: i32, %arg1: i32) -> (i32, i32, i32) {
    %c0_i32 = arith.constant 0 : i32
    %c0_i32_0 = arith.constant 0 : i32
    %c0_i32_1 = arith.constant 0 : i32
    return %arg0, %c0_i32, %c0_i32_0 : i32, i32, i32
  }
}

</mosaic_0001>

<bundles_post_ra>
// kernel: tpu_custom_call.1
= control target key start
LH: loop header
LB: loop body
LE: loop exit
PB: predicated region body
PF: predicated region fallthrough
CT: control target
= control target key end

     0   :  { %9 = vsyncpa [#allocation4], 0  ;;  %s389_s0 = inlined_call_operand.hbm [shape: f32[8,16], index: 0, kind: input, shape index: {}]   ;;  %s390_s1 = inlined_call_operand.hbm [shape: f32[8,16], index: 1, kind: input, shape index: {}]   ;;  %s391_s2 = inlined_call_operand.hbm [shape: f32[32,32], index: 2, kind: input, shape index: {}]   ;;  %s392_s3 = inlined_call_operand.vmem [shape: f32[1,32], index: 3, kind: input, shape index: {}]   ;;  %s393_s4 = inlined_call_operand.hbm [shape: f32[1,1,32], index: 4, kind: output, shape index: {}]  }
   0x1   :  { %10 = vsyncpa [#allocation7], 0  ;;  %s34_s17 = sshll.u32 %s390_s1, 4  ;;  %s35_s17 = int_to_ptr.hbm [resolvable:$true] %s34_s17 }
   0x2   :  { %11 = vsyncpa [#allocation5], 0  ;;  %s328_s18 = smov [#allocation6]   ;;  %s20_s22 = sshll.u32 %s389_s0, 4  ;;  %s21_s22 = int_to_ptr.hbm [resolvable:$true] %s20_s22 }
   0x3   :  { %s36_s19 = sshll.u32 %s328_s18, 4  ;;  %s329_s23 = smov [#allocation3]   ;;  %s37_s19 = int_to_ptr.vmem [resolvable:$true] %s36_s19 }
   0x4   :  { %39 = dma.hbm_to_vmem [thread:$0]  %s35_s17, 128, %s37_s19, [#allocation7]  }
   0x5   :  { %s22_s24 = sshll.u32 %s329_s23, 4  ;;  %s44_s27 = sshll.u32 %s391_s2, 4  ;;  %s23_s24 = int_to_ptr.vmem [resolvable:$true] %s22_s24  ;;  %s45_s27 = int_to_ptr.hbm [resolvable:$true] %s44_s27 }
   0x6   :  { %25 = dma.hbm_to_vmem [thread:$0]  %s21_s22, 128, %s23_s24, [#allocation4]  }
   0x7   :  { %s330_s1 = smov [#allocation8]   ;;  %s331_s29 = smov 128  }
   0x8   :  { %s46_s28 = sshll.u32 %s330_s1, 4  ;;  %s332_s30 = smov 8   ;;  %s47_s28 = int_to_ptr.vmem [resolvable:$true] %s46_s28 }
   0x9   :  { %52 = dma.hbm_to_vmem [thread:$0]  %s45_s27, 512, %s47_s28, [#allocation7], %s331_s29, %s331_s29, %s332_s30  }
   0xa   :  { %322 = dma.done.wait [#allocation4], 128  }
   0xb   :  { %323 = vsyncadd [#allocation4], 4294967168 }
   0xc   :  { %324 = dma.done.wait [#allocation7], 640  }
   0xd   :  { %325 = vsyncadd [#allocation7], 4294966656  ;;  %v78_v0 = vld [vmem:[#allocation8 + $0x18] sm:$0xff]  ;;  %v76_v1 = vld [vmem:[#allocation8 + $0x8] sm:$0xff]  ;;  %s333_s0 = smov 112   ;;  %vm93_vm0 = vcmask 130048  }
   0xe   :  { %91 = vrot.lane.b32.xlu0 %v78_v0, %s333_s0  ;;  %87 = vrot.lane.b32.xlu1 %v76_v1, %s333_s0  ;;  %v77_v2 = vld [vmem:[#allocation8 + $0x10] sm:$0xff]  ;;  %v75_v3 = vld [vmem:[#allocation8] sm:$0xff]  ;;  %v80_v9 = vld [vmem:[#allocation6] sm:$0xff]  ;;  %vm73_vm1 = vcmask 253952   ;;  %v334_v10 = vmov 0.0   ;;  %vm173_vm2 = vcmask 261120  }
   0xf   :  { %212 = vmatpush.xpose.msk.msra.mxu1 %vm93_vm0, %v78_v0  ;;  %v79_v4 = vld [vmem:[#allocation3] sm:$0xff]  ;;  %74 = vst.msk [vmem:[#allocation2] sm:$0x1] %vm73_vm1, %v334_v10  ;;  %v225_v12 = vld [vmem:[%s392_s3] ss:$0 sm:$0xff]  ;;  %s335_s6 = smov [#allocation9]  }
  0x10   :  { %s194_s7 = sshll.u32 %s335_s6, 4  ;;  %s196_s9 = sshll.u32 %s393_s4, 4  ;;  %s195_s7 = int_to_ptr.vmem [resolvable:$true] %s194_s7  ;;  %s197_s9 = int_to_ptr.hbm [resolvable:$true] %s196_s9 }
  0x13   :  { %213 = vmatpush.xpose.msk.msra.mxu1 %vm93_vm0, %v77_v2 }
  0x16   :  { %89 = vrot.lane.b32.xlu0 %v77_v2, %s333_s0  ;;  %85 = vrot.lane.b32.xlu1 %v75_v3, %s333_s0  ;;  %v172_v23 = vld [vmem:[#allocation2] sm:$0x1] }
  0x17   :  { %214 = vmatpush.xpose.msk.msra.mxu1 %vm93_vm0, %v76_v1 }
  0x1b   :  { %215 = vmatpush.xpose.msk.msra.mxu1 %vm93_vm0, %v75_v3 }
  0x1e   :  { %216 = vmatmul.msk.f32.vlgmr.msra.gmra.mxu1 %vm93_vm0, %v79_v4 }
  0x80   :  { %v92_v5 = vpop.permute.xlu0 %91  ;;  %v88_v6 = vpop.permute.xlu1 %87 }
  0x81   :  { %207 = vmatpush.xpose.msk.msra.mxu0 %vm93_vm0, %v92_v5 }
  0x88   :  { %v90_v7 = vpop.permute.xlu0 %89  ;;  %v86_v8 = vpop.permute.xlu1 %85 }
  0x89   :  { %208 = vmatpush.xpose.msk.msra.mxu0 %vm93_vm0, %v90_v7 }
  0x8d   :  { %209 = vmatpush.xpose.msk.msra.mxu0 %vm93_vm0, %v88_v6 }
  0x91   :  { %210 = vmatpush.xpose.msk.msra.mxu0 %vm93_vm0, %v86_v8 }
  0x94   :  { %211 = vmatmul.msk.f32.vlgmr.msra.gmra.mxu0 %vm93_vm0, %v80_v9 }
  0x9b   :  { %v153_v11 = vpop.f32.mrf.mxu1 }
 0x111   :  { %v122_v13 = vpop.f32.mrf.mxu0 }
 0x112   :  { %v154_v14 = vadd.f32 %v153_v11, %v122_v13 }
 0x114   :  { %v160_v15 = vadd.f32 %v225_v12, %v154_v14 }
 0x116   :  { %v161_v16 = vmax.f32 %v160_v15, 0.0 }
 0x118   :  { %v174_v17 = vsel %vm173_vm2, %v161_v16, 0.0 }
 0x119   :  { %v175_v18 = vrot.slane %v174_v17, 4 }
 0x11b   :  { %v176_v19 = vadd.f32 %v175_v18, %v174_v17 }
 0x11d   :  { %v177_v20 = vrot.slane %v176_v19, 2 }
 0x11f   :  { %v178_v21 = vadd.f32 %v177_v20, %v176_v19 }
 0x121   :  { %v179_v22 = vrot.slane %v178_v21, 1 }
 0x123   :  { %v180_v24 = vadd.f32 %v179_v22, %v178_v21 }
 0x125   :  { %v181_v25 = vadd.f32 %v180_v24, %v172_v23 }
 0x127   :  { %183 = vst.msk [vmem:[#allocation2] sm:$0x1] %vm73_vm1, %v181_v25 }
 0x12e   :  { %v187_v26 = vld [vmem:[#allocation2] sm:$0x1] }
 0x12f   :  { %188 = vst.msk [vmem:[#allocation9] sm:$0x1] %vm73_vm1, %v187_v26 }
 0x130   :  { %199 = dma.vmem_to_hbm [thread:$0]  %s195_s7, 16, %s197_s9, [#allocation5]  }
 0x131   :  { %326 = dma.done.wait [#allocation5], 16  }
 0x132   :  { %327 = vsyncadd [#allocation5], 4294967280 }
 0x133   :  { %204 = vsyncpa [#allocation4], 1 }
 0x134   :  { %205 = vsyncpa [#allocation7], 1 }
 0x135   :  { %206 = vsyncpa [#allocation5], 1 }

</bundles_post_ra>
